<compile_context>
chip_gen: v5e
topology: v5e:2x2
jax: 0.10.0
libtpu: 0.0.40
codegen_flags: <defaults>
</compile_context>

<pallas_src>
import functools
import math

import jax
import jax.numpy as jnp
from jax import lax
from jax.experimental import pallas as pl
from jax.experimental.pallas import tpu as pltpu

_LANE = 128  # TPU vreg lane width


def _mlp_kernel(num_stacked, x_ref, w0_ref, b0_ref, *rest):
    """Fused MLP forward for one batch tile.

    x_ref   : (tile, n_features) f32 block of the original (batch, features) x.
    w0_ref  : (hidden, n_features) first-layer weight (PyTorch (out, in)).
    b0_ref  : (hidden, 1) first-layer bias.
    rest    : ([w_stack (L-1,H,H), b_stack (L-1,H,1)], w_col (H,1),
               b_last (1,) in SMEM, out_ref (1, tile)).
    """
    out_ref = rest[-1]
    if num_stacked > 0:
        wstk_ref, bstk_ref, w_col_ref, b_last_ref = rest[:-1]
    else:
        w_col_ref, b_last_ref = rest[:-1]

    x = x_ref[...]                       # (tile, n_features), f32
    w0 = w0_ref[...]                     # (hidden, n_features)
    b0 = b0_ref[...]                     # (hidden, 1)

    # First layer: contract the feature dim of BOTH operands so the result is
    # already transposed -> (hidden, tile) with batch on the 128-lane axis.
    h = lax.dot_general(w0, x, (((1,), (1,)), ((), ())),
                        preferred_element_type=jnp.float32)
    h = jnp.maximum(h + b0, 0.0)

    # Remaining hidden layers, weights read from the stacked grid-invariant ref.
    for layer in range(num_stacked):
        w = wstk_ref[layer]              # (hidden, hidden)
        b = bstk_ref[layer]              # (hidden, 1)
        h = jnp.dot(w, h, preferred_element_type=jnp.float32)
        h = jnp.maximum(h + b, 0.0)

    # Final (hidden -> 1) layer: VPU multiply + sublane reduction instead of a
    # 1-column MXU matvec.  Result is a lane-dense (1, tile) row.
    w_col = w_col_ref[...]               # (hidden, 1)
    b_last = b_last_ref[0]               # f32 scalar from SMEM
    y = jnp.sum(h * w_col, axis=0, keepdims=True) + b_last
    out_ref[...] = y.astype(out_ref.dtype)


def _auto_batch_tile(batch):
    """Pick a large, lane-aligned batch tile.

    Small batches run as a single full-array tile.  Large batches use big
    tiles (amortizes the ~0.35us/grid-step overhead; a 16384x32 f32 block is
    only 2 MiB) while keeping >= 4 grid steps so the two v7x TensorCores see
    balanced work.
    """
    if batch <= 1024:
        return batch
    for tile in (16384, 8192, 4096, 2048, 1024, 512, 256, _LANE):
        if pl.cdiv(batch, tile) >= 4:
            return tile
    return _LANE


@functools.partial(jax.jit, static_argnames=("batch_tile",))
def linear_model_forward(x, layers, *, batch_tile=None):
    """Run the fused MLP Pallas kernel.

    x      : (batch, n_features) array.
    layers : [(W, b), ...] in PyTorch layout: W (out, in), b (out,);
             last entry is the (1, hidden) output layer.
    """
    batch, n_features = x.shape
    num_hidden_layers = len(layers) - 1
    if num_hidden_layers < 1:
        raise ValueError("LinearModel needs at least one hidden layer")
    w_last, b_last = layers[-1]
    if w_last.shape[0] != 1:
        raise ValueError("LinearModel output size must be 1")
    hidden = layers[0][0].shape[0]

    tile = _auto_batch_tile(batch) if batch_tile is None else min(batch_tile, batch)
    if tile != batch and tile % _LANE != 0:
        raise ValueError("batch_tile must be a multiple of 128 (or >= batch)")
    num_tiles = pl.cdiv(batch, tile)

    if x.dtype != jnp.float32:
        x = x.astype(jnp.float32)

    # --- flat params + BlockSpecs (weights are grid-invariant: fetched once,
    # resident in VMEM across the whole grid) -------------------------------
    flat_params = []
    in_specs = [pl.BlockSpec((tile, n_features), lambda i: (i, 0))]

    w0, b0 = layers[0]
    w0 = w0.astype(jnp.float32)
    b0 = b0.reshape(-1, 1).astype(jnp.float32)
    flat_params += [w0, b0]
    in_specs += [
        pl.BlockSpec(w0.shape, lambda i: (0, 0)),
        pl.BlockSpec(b0.shape, lambda i: (0, 0)),
    ]

    num_stacked = num_hidden_layers - 1
    if num_stacked > 0:
        w_stack = jnp.stack([w.astype(jnp.float32) for w, _ in layers[1:-1]])
        b_stack = jnp.stack(
            [b.reshape(-1, 1).astype(jnp.float32) for _, b in layers[1:-1]])
        flat_params += [w_stack, b_stack]
        in_specs += [
            pl.BlockSpec(w_stack.shape, lambda i: (0, 0, 0)),
            pl.BlockSpec(b_stack.shape, lambda i: (0, 0, 0)),
        ]

    w_col = w_last.reshape(-1, 1).astype(jnp.float32)      # (hidden, 1)
    b_last_s = b_last.reshape(1).astype(jnp.float32)        # (1,) scalar
    flat_params += [w_col, b_last_s]
    in_specs += [
        pl.BlockSpec(w_col.shape, lambda i: (0, 0)),
        # Scalar output bias: SMEM, not an (8,128)-padded VMEM tile.
        pl.BlockSpec(memory_space=pltpu.MemorySpace.SMEM),
    ]

    out_specs = pl.BlockSpec((1, tile), lambda i: (0, i))

    # --- VMEM budget: double-buffered x/out blocks + live intermediates +
    # resident weights, 2x safety margin, capped at 40 MiB (< v7x's 64 MiB). --
    est = 2 * tile * n_features * 4                       # x block, double-buffered
    est += 2 * tile * 4                                   # out block, double-buffered
    est += (num_hidden_layers + 1) * hidden * tile * 4    # live (hidden, tile) temps
    est += sum(int(a.size) * a.dtype.itemsize for a in flat_params)
    vmem_limit = int(min(max(2 * est, 16 * 1024 * 1024), 40 * 1024 * 1024))

    kernel = functools.partial(_mlp_kernel, num_stacked)
    out = pl.pallas_call(
        kernel,
        out_shape=jax.ShapeDtypeStruct((1, batch), jnp.float32),
        grid=(num_tiles,),
        in_specs=in_specs,
        out_specs=out_specs,
        compiler_params=pltpu.CompilerParams(
            dimension_semantics=("parallel",),   # batch tiles shard across TCs
            vmem_limit_bytes=vmem_limit,
        ),
    )(x, *flat_params)

    # Back to PyTorch's (batch, 1) output.
    return out.reshape(batch, 1)


def init_linear_model_params(key, n_features, num_hidden_layers,
                             hidden_layer_size, output_size=1):
    """nn.Linear default init (uniform +-1/sqrt(fan_in)), PyTorch layout."""
    layers = []
    in_f = n_features
    dims = [hidden_layer_size] * num_hidden_layers + [output_size]
    for out_f in dims:
        key, kw, kb = jax.random.split(key, 3)
        bound = 1.0 / math.sqrt(in_f)
        w = jax.random.uniform(kw, (out_f, in_f), jnp.float32, -bound, bound)
        b = jax.random.uniform(kb, (out_f,), jnp.float32, -bound, bound)
        layers.append((w, b))
        in_f = out_f
    return layers


def _reference_forward(x, layers):
    """Pure-JAX re-implementation of the PyTorch module (correctness check)."""
    h = x
    for i, (w, b) in enumerate(layers):
        h = h @ w.T + b
        if i < len(layers) - 1:
            h = jnp.maximum(h, 0.0)
    return h


if __name__ == "__main__":
    # Shapes consistent with the module: n_features=32, hidden_layer_size=32.
    n_features = 32
    hidden_layer_size = 32

    key = jax.random.PRNGKey(0)
    key, kx1, kx2, kx3 = jax.random.split(key, 4)
    layers2 = init_linear_model_params(key, n_features, 2, hidden_layer_size)

    # Case 1: tiny batch -> single full-array tile.
    x_small = jax.random.normal(kx1, (8, n_features), jnp.float32)
    out_small = jax.block_until_ready(linear_model_forward(x_small, layers2))
    ref_small = _reference_forward(x_small, layers2)
    assert out_small.shape == (8, 1), out_small.shape
    assert jnp.allclose(out_small, ref_small, atol=1e-3, rtol=1e-3), (
        "Pallas output (single tile) does not match reference")

    # Case 2: non-128-multiple batch with an explicit small tile -> 2 grid
    # steps, ragged edge block (masked writes, no wrapper-side padding copy).
    x_mid = jax.random.normal(kx2, (200, n_features), jnp.float32)
    out_mid = jax.block_until_ready(
        linear_model_forward(x_mid, layers2, batch_tile=128))
    ref_mid = _reference_forward(x_mid, layers2)
    assert out_mid.shape == (200, 1), out_mid.shape
    assert jnp.allclose(out_mid, ref_mid, atol=1e-3, rtol=1e-3), (
        "Pallas output (ragged multi-tile grid) does not match reference")

    # Case 3: single hidden layer (no stacked-weight ref path).
    key2 = jax.random.PRNGKey(1)
    layers1 = init_linear_model_params(key2, n_features, 1, hidden_layer_size)
    x1 = jax.random.normal(kx3, (64, n_features), jnp.float32)
    out1 = jax.block_until_ready(linear_model_forward(x1, layers1))
    ref1 = _reference_forward(x1, layers1)
    assert out1.shape == (64, 1), out1.shape
    assert jnp.allclose(out1, ref1, atol=1e-3, rtol=1e-3), (
        "Pallas output (1 hidden layer) does not match reference")

    print("KERNEL_OK")
</pallas_src>

<mosaic_0001>
module attributes {stable_mosaic.version = 11 : i64} {
  func.func @_mlp_kernel(%arg0: i32, %arg1: memref<8x32xf32, #tpu.memory_space<vmem>>, %arg2: memref<32x32xf32, #tpu.memory_space<vmem>>, %arg3: memref<32x1xf32, #tpu.memory_space<vmem>>, %arg4: memref<1x32x32xf32, #tpu.memory_space<vmem>>, %arg5: memref<1x32x1xf32, #tpu.memory_space<vmem>>, %arg6: memref<32x1xf32, #tpu.memory_space<vmem>>, %arg7: memref<1xf32, #tpu.memory_space<smem>>, %arg8: memref<1x8xf32, #tpu.memory_space<vmem>>) attributes {dimension_semantics = [#tpu.dimension_semantics<parallel>], iteration_bounds = array<i64: 1>, scalar_prefetch = 0 : i64, scratch_operands = 0 : i64, tpu.core_type = #tpu.core_type<tc>, window_params = [{transform_indices = @transform_0, window_bounds = array<i64: 8, 32>}, {pipeline_mode = #tpu.pipeline_mode<synchronous>, transform_indices = @transform_1, window_bounds = array<i64: 32, 32>}, {pipeline_mode = #tpu.pipeline_mode<synchronous>, transform_indices = @transform_2, window_bounds = array<i64: 32, 1>}, {pipeline_mode = #tpu.pipeline_mode<synchronous>, transform_indices = @transform_3, window_bounds = array<i64: 1, 32, 32>}, {pipeline_mode = #tpu.pipeline_mode<synchronous>, transform_indices = @transform_4, window_bounds = array<i64: 1, 32, 1>}, {pipeline_mode = #tpu.pipeline_mode<synchronous>, transform_indices = @transform_5, window_bounds = array<i64: 32, 1>}, {transform_indices = @transform_6, window_bounds = array<i64: 1>}, {transform_indices = @transform_7, window_bounds = array<i64: 1, 8>}]} {
    %c0 = arith.constant 0 : index
    %c0_0 = arith.constant 0 : index
    %0 = vector.load %arg1[%c0, %c0_0] : memref<8x32xf32, #tpu.memory_space<vmem>>, vector<8x32xf32>
    %c0_1 = arith.constant 0 : index
    %c0_2 = arith.constant 0 : index
    %1 = vector.load %arg2[%c0_1, %c0_2] : memref<32x32xf32, #tpu.memory_space<vmem>>, vector<32x32xf32>
    %c0_3 = arith.constant 0 : index
    %c0_4 = arith.constant 0 : index
    %2 = vector.load %arg3[%c0_3, %c0_4] : memref<32x1xf32, #tpu.memory_space<vmem>>, vector<32x1xf32>
    %cst = arith.constant dense<0.000000e+00> : vector<32x8xf32>
    %3 = tpu.matmul %1, %0, %cst {dimension_numbers = #tpu.dot_dimension_numbers<[1], [1], [0], [0], [0, 0, 1, 0], [], []>} : vector<32x32xf32>, vector<8x32xf32>, vector<32x8xf32> -> vector<32x8xf32>
    %4 = vector.broadcast %2 : vector<32x1xf32> to vector<32x8xf32>
    %5 = arith.addf %3, %4 : vector<32x8xf32>
    %cst_5 = arith.constant 0.000000e+00 : f32
    %6 = vector.broadcast %cst_5 : f32 to vector<32x8xf32>
    %7 = arith.maximumf %5, %6 : vector<32x8xf32>
    %c0_6 = arith.constant 0 : index
    %c0_7 = arith.constant 0 : index
    %c0_8 = arith.constant 0 : index
    %8 = vector.load %arg4[%c0_6, %c0_7, %c0_8] : memref<1x32x32xf32, #tpu.memory_space<vmem>>, vector<1x32x32xf32>
    %9 = vector.shape_cast %8 : vector<1x32x32xf32> to vector<32x32xf32>
    %c0_9 = arith.constant 0 : index
    %c0_10 = arith.constant 0 : index
    %c0_11 = arith.constant 0 : index
    %10 = vector.load %arg5[%c0_9, %c0_10, %c0_11] : memref<1x32x1xf32, #tpu.memory_space<vmem>>, vector<1x32x1xf32>
    %11 = vector.shape_cast %10 : vector<1x32x1xf32> to vector<32x1xf32>
    %cst_12 = arith.constant dense<0.000000e+00> : vector<32x8xf32>
    %12 = tpu.matmul %9, %7, %cst_12 {dimension_numbers = #tpu.dot_dimension_numbers<[1], [0], [0], [1], [0, 0, 1, 1], [], []>} : vector<32x32xf32>, vector<32x8xf32>, vector<32x8xf32> -> vector<32x8xf32>
    %13 = vector.broadcast %11 : vector<32x1xf32> to vector<32x8xf32>
    %14 = arith.addf %12, %13 : vector<32x8xf32>
    %cst_13 = arith.constant 0.000000e+00 : f32
    %15 = vector.broadcast %cst_13 : f32 to vector<32x8xf32>
    %16 = arith.maximumf %14, %15 : vector<32x8xf32>
    %c0_14 = arith.constant 0 : index
    %c0_15 = arith.constant 0 : index
    %17 = vector.load %arg6[%c0_14, %c0_15] : memref<32x1xf32, #tpu.memory_space<vmem>>, vector<32x1xf32>
    %c0_16 = arith.constant 0 : index
    %18 = memref.load %arg7[%c0_16] : memref<1xf32, #tpu.memory_space<smem>>
    %19 = vector.broadcast %17 : vector<32x1xf32> to vector<32x8xf32>
    %20 = arith.mulf %16, %19 : vector<32x8xf32>
    %cst_17 = arith.constant dense<0.000000e+00> : vector<8xf32>
    %21 = vector.multi_reduction <add>, %20, %cst_17 [0] : vector<32x8xf32> to vector<8xf32>
    %22 = vector.shape_cast %21 : vector<8xf32> to vector<1x8xf32>
    %23 = vector.broadcast %18 : f32 to vector<1x8xf32>
    %24 = arith.addf %22, %23 : vector<1x8xf32>
    %c0_18 = arith.constant 0 : index
    %c0_19 = arith.constant 0 : index
    %25 = vector.load %arg8[%c0_18, %c0_19] : memref<1x8xf32, #tpu.memory_space<vmem>>, vector<1x8xf32>
    tpu.vector_store %arg8[%c0_18, %c0_19], %24 {strides = array<i32>} : memref<1x8xf32, #tpu.memory_space<vmem>>, vector<1x8xf32>,
    return
  }
  func.func @transform_0(%arg0: i32) -> (i32, i32) {
    %c0_i32 = arith.constant 0 : i32
    %c0_i32_0 = arith.constant 0 : i32
    return %arg0, %c0_i32 : i32, i32
  }
  func.func @transform_1(%arg0: i32) -> (i32, i32) {
    %c0_i32 = arith.constant 0 : i32
    %c0_i32_0 = arith.constant 0 : i32
    %c0_i32_1 = arith.constant 0 : i32
    return %c0_i32, %c0_i32_0 : i32, i32
  }
  func.func @transform_2(%arg0: i32) -> (i32, i32) {
    %c0_i32 = arith.constant 0 : i32
    %c0_i32_0 = arith.constant 0 : i32
    %c0_i32_1 = arith.constant 0 : i32
    return %c0_i32, %c0_i32_0 : i32, i32
  }
  func.func @transform_3(%arg0: i32) -> (i32, i32, i32) {
    %c0_i32 = arith.constant 0 : i32
    %c0_i32_0 = arith.constant 0 : i32
    %c0_i32_1 = arith.constant 0 : i32
    %c0_i32_2 = arith.constant 0 : i32
    return %c0_i32, %c0_i32_0, %c0_i32_1 : i32, i32, i32
  }
  func.func @transform_4(%arg0: i32) -> (i32, i32, i32) {
    %c0_i32 = arith.constant 0 : i32
    %c0_i32_0 = arith.constant 0 : i32
    %c0_i32_1 = arith.constant 0 : i32
    %c0_i32_2 = arith.constant 0 : i32
    return %c0_i32, %c0_i32_0, %c0_i32_1 : i32, i32, i32
  }
  func.func @transform_5(%arg0: i32) -> (i32, i32) {
    %c0_i32 = arith.constant 0 : i32
    %c0_i32_0 = arith.constant 0 : i32
    %c0_i32_1 = arith.constant 0 : i32
    return %c0_i32, %c0_i32_0 : i32, i32
  }
  func.func @transform_6(%arg0: i32) -> i32 {
    %c0_i32 = arith.constant 0 : i32
    %c0_i32_0 = arith.constant 0 : i32
    return %c0_i32 : i32
  }
  func.func @transform_7(%arg0: i32) -> (i32, i32) {
    %c0_i32 = arith.constant 0 : i32
    %c0_i32_0 = arith.constant 0 : i32
    return %c0_i32, %arg0 : i32, i32
  }
}

</mosaic_0001>

<bundles_post_ra>
// kernel: linear_model_forward.1
= control target key start
LH: loop header
LB: loop body
LE: loop exit
PB: predicated region body
PF: predicated region fallthrough
CT: control target
= control target key end

     0   :  { %vm57_vm0 = vcmask 261120   ;;  %v287_v3 = vmov 0   ;;  %s408_s0 = inlined_call_operand.vmem [shape: f32[8,32], index: 0, kind: input, shape index: {}]   ;;  %s409_s1 = inlined_call_operand.vmem [shape: f32[32,32], index: 1, kind: input, shape index: {}]   ;;  %s410_s2 = inlined_call_operand.vmem [shape: f32[32,1], index: 2, kind: input, shape index: {}]   ;;  %s411_s3 = inlined_call_operand.vmem [shape: f32[1,32,32], index: 3, kind: input, shape index: {}]   ;;  %s412_s4 = inlined_call_operand.vmem [shape: f32[1,32,1], index: 4, kind: input, shape index: {}]   ;;  %s413_s5 = inlined_call_operand.vmem [shape: f32[32,1], index: 5, kind: input, shape index: {}]   ;;  %s414_s6 = inlined_call_operand.<no memory space> [shape: f32[1], index: 6, kind: input, shape index: {}]   ;;  %s415_s7 = inlined_call_operand.hbm [shape: f32[1,8], index: 7, kind: output, shape index: {}]  }
   0x1   :  { %v28_v0 = vld [vmem:[%s408_s0] sm:$0xff]  ;;  %v36_v1 = vld [vmem:[%s410_s2 + $0x18] sm:$0xff]  ;;  %v30_v2 = vld [vmem:[%s409_s1 + $0x8] sm:$0xff]  ;;  %258 = vset.pattern.permute.xlu0 %v287_v3  ;;  %259 = vset.pattern.permute.xlu1 %v287_v3 }
   0x2   :  { %251 = vmatpush.xpose.msk.msra.mxu3 %vm57_vm0, %v28_v0  ;;  %v34_v4 = vld [vmem:[%s410_s2 + $0x8] sm:$0xff]  ;;  %54 = vperm.xlu0 %258, %v36_v1   ;;  %v29_v5 = vld [vmem:[%s409_s1] sm:$0xff] }
   0x3   :  { %44 = vperm.xlu1 %259, %v34_v4   ;;  %242 = vmatpush.xpose.msk.msra.mxu0 %vm57_vm0, %v28_v0 }
   0x4   :  { %260 = vset.pattern.permute.xlu2 %v287_v3 }
   0x5   :  { %244 = vmatmul.msk.f32.vlgmr.msra.gmra.mxu3 %vm57_vm0, %v30_v2 }
   0x6   :  { %13 = vsyncpa [#allocation4], 0  ;;  %243 = vmatmul.msk.f32.vlgmr.msra.gmra.mxu0 %vm57_vm0, %v29_v5  ;;  %v35_v6 = vld [vmem:[%s410_s2 + $0x10] sm:$0xff]  ;;  %v33_v7 = vld [vmem:[%s410_s2] sm:$0xff]  ;;  %vm208_vm1 = vcmask 64512   ;;  %s288_s15 = smov [#allocation3]  }
   0x7   :  { %v31_v8 = vld [vmem:[%s409_s1 + $0x10] sm:$0xff]  ;;  %v113_v10 = vld [vmem:[%s412_s4 + $0x18] sm:$0xff]  ;;  %v180_v12 = vld [vmem:[%s413_s5 + $0x8] sm:$0xff]  ;;  %s231_s16 = sshll.u32 %s288_s15, 4  ;;  %s233_s19 = sshll.u32 %s415_s7, 4  ;;  %vm224_vm2 = vcmask 57344   ;;  %s232_s16 = int_to_ptr.vmem [resolvable:$true] %s231_s16  ;;  %s234_s19 = int_to_ptr.hbm [resolvable:$true] %s233_s19 }
   0x8   :  { %v112_v9 = vld [vmem:[%s412_s4 + $0x10] sm:$0xff]  ;;  %v32_v11 = vld [vmem:[%s409_s1 + $0x18] sm:$0xff]  ;;  %v110_v14 = vld [vmem:[%s412_s4] sm:$0xff] }
   0x9   :  { %v181_v13 = vld [vmem:[%s413_s5 + $0x10] sm:$0xff]  ;;  %116 = vperm.xlu2 %260, %v110_v14   ;;  %v111_v16 = vld [vmem:[%s412_s4 + $0x8] sm:$0xff]  ;;  %v179_v20 = vld [vmem:[%s413_s5] sm:$0xff] }
   0xa   :  { %49 = vperm.xlu0 %258, %v35_v6   ;;  %v182_v28 = vld [vmem:[%s413_s5 + $0x18] sm:$0xff]  ;;  %v106_v34 = vld [vmem:[%s411_s3] sm:$0xff]  ;;  %v108_v35 = vld [vmem:[%s411_s3 + $0x10] sm:$0xff] }
   0xb   :  { %39 = vperm.xlu1 %259, %v33_v7   ;;  %v107_v36 = vld [vmem:[%s411_s3 + $0x8] sm:$0xff]  ;;  %v109_v37 = vld [vmem:[%s411_s3 + $0x18] sm:$0xff] }
   0xd   :  { %245 = vmatmul.msk.f32.gmra.mxu3 %vm57_vm0, %v31_v8 }
  0x11   :  { %121 = vperm.xlu2 %260, %v111_v16  }
  0x12   :  { %126 = vperm.xlu0 %258, %v112_v9  }
  0x13   :  { %131 = vperm.xlu1 %259, %v113_v10   ;;  %v222_v10 = vstv %s414_s6 }
  0x15   :  { %246 = vmatmul.msk.f32.gmra.mxu3 %vm57_vm0, %v32_v11 }
  0x19   :  { %186 = vperm.xlu2 %260, %v179_v20  }
  0x1a   :  { %191 = vperm.xlu0 %258, %v180_v12  }
  0x1b   :  { %196 = vperm.xlu1 %259, %v181_v13  }
  0x21   :  { %201 = vperm.xlu2 %260, %v182_v28  }
  0x63   :  { %v117_v38 = vpop.permute.xlu2 %116 }
  0x6b   :  { %v122_v39 = vpop.permute.xlu2 %121 }
  0x73   :  { %v187_v47 = vpop.permute.xlu2 %186 }
  0x74   :  { %v55_v17 = vpop.permute.xlu0 %54 }
  0x75   :  { %v45_v19 = vpop.permute.xlu1 %44 }
  0x7b   :  { %v202_v63 = vpop.permute.xlu2 %201 }
  0x7c   :  { %v50_v21 = vpop.permute.xlu0 %49 }
  0x7d   :  { %v40_v29 = vpop.permute.xlu1 %39 }
  0x83   :  { %v90_v25 = vpop.f32.mrf.mxu0 }
  0x84   :  { %v91_v31 = vadd.f32 %v90_v25, %v40_v29  ;;  %v127_v41 = vpop.permute.xlu0 %126 }
  0x85   :  { %v132_v43 = vpop.permute.xlu1 %131 }
  0x86   :  { %v102_v33 = vmax.f32 %v91_v31, 0.0 }
  0x88   :  { %v93_v15 = vpop.f32.mrf.mxu3 }
  0x89   :  { %v94_v26 = vadd.f32 %v93_v15, %v45_v19 }
  0x8b   :  { %v103_v32 = vmax.f32 %v94_v26, 0.0 }
  0x8c   :  { %v192_v53 = vpop.permute.xlu0 %191 }
  0x8d   :  { %v197_v55 = vpop.permute.xlu1 %196 }
  0x90   :  { %v96_v18 = vpop.f32.mrf.mxu3 }
  0x91   :  { %v97_v23 = vadd.f32 %v96_v18, %v50_v21 }
  0x93   :  { %v104_v30 = vmax.f32 %v97_v23, 0.0 }
  0x98   :  { %v99_v22 = vpop.f32.mrf.mxu3 }
  0x99   :  { %v100_v24 = vadd.f32 %v99_v22, %v55_v17 }
  0x9b   :  { %v105_v27 = vmax.f32 %v100_v24, 0.0 }
  0x9d   :  { %158 = vmatpush.msra.mxu1 %v105_v27  ;;  %252 = vmatpush.msra.mxu2 %v105_v27 }
  0x9f   :  { %159 = vmatpush.msra.mxu1 %v104_v30  ;;  %253 = vmatpush.msra.mxu2 %v104_v30 }
  0xa1   :  { %160 = vmatpush.msra.mxu1 %v103_v32  ;;  %254 = vmatpush.msra.mxu2 %v103_v32 }
  0xa3   :  { %161 = vmatpush.msra.mxu1 %v102_v33  ;;  %255 = vmatpush.msra.mxu2 %v102_v33 }
  0xa4   :  { %247 = vmatmul.msk.f32.vlgmr.msra.gmra.mxu1 %vm57_vm0, %v106_v34  ;;  %249 = vmatmul.msk.f32.vlgmr.msra.gmra.mxu2 %vm57_vm0, %v108_v35 }
  0xac   :  { %248 = vmatmul.msk.f32.gmra.mxu1 %vm57_vm0, %v107_v36  ;;  %250 = vmatmul.msk.f32.gmra.mxu2 %vm57_vm0, %v109_v37 }
 0x121   :  { %v163_v40 = vpop.f32.mrf.mxu1 }
 0x122   :  { %v164_v42 = vadd.f32 %v163_v40, %v117_v38 }
 0x124   :  { %v175_v45 = vmax.f32 %v164_v42, 0.0 }
 0x126   :  { %v204_v50 = vmul.f32 %v187_v47, %v175_v45 }
 0x127   :  { %v169_v44 = vpop.f32.mrf.mxu2 }
 0x128   :  { %v170_v46 = vadd.f32 %v169_v44, %v127_v41  ;;  %v209_v57 = vsel %vm208_vm1, %v204_v50, 0.0 }
 0x129   :  { %v166_v48 = vpop.f32.mrf.mxu1 }
 0x12a   :  { %v167_v49 = vadd.f32 %v166_v48, %v122_v39  ;;  %v177_v51 = vmax.f32 %v170_v46, 0.0 }
 0x12c   :  { %v176_v52 = vmax.f32 %v167_v49, 0.0  ;;  %v206_v58 = vmul.f32 %v197_v55, %v177_v51 }
 0x12e   :  { %v205_v54 = vmul.f32 %v192_v53, %v176_v52  ;;  %v212_v0 = vsel %vm208_vm1, %v206_v58, 0.0 }
 0x12f   :  { %v172_v56 = vpop.f32.mrf.mxu2 }
 0x130   :  { %v210_v59 = vsel %vm208_vm1, %v205_v54, 0.0  ;;  %v173_v60 = vadd.f32 %v172_v56, %v132_v43 }
 0x131   :  { %v211_v61 = vadd.f32 %v210_v59, %v209_v57 }
 0x132   :  { %v178_v62 = vmax.f32 %v173_v60, 0.0 }
 0x133   :  { %v213_v2 = vadd.f32 %v212_v0, %v211_v61 }
 0x134   :  { %v207_v1 = vmul.f32 %v202_v63, %v178_v62 }
 0x136   :  { %v214_v3 = vsel %vm208_vm1, %v207_v1, 0.0 }
 0x137   :  { %v215_v4 = vadd.f32 %v214_v3, %v213_v2 }
 0x139   :  { %v216_v5 = vrot.slane %v215_v4, 4 }
 0x13b   :  { %v217_v6 = vadd.f32 %v216_v5, %v215_v4 }
 0x13d   :  { %v218_v7 = vrot.slane %v217_v6, 2 }
 0x13f   :  { %v219_v8 = vadd.f32 %v218_v7, %v217_v6 }
 0x141   :  { %v220_v9 = vrot.slane %v219_v8, 1 }
 0x143   :  { %v221_v11 = vadd.f32 %v220_v9, %v219_v8 }
 0x145   :  { %v223_v12 = vadd.f32 %v222_v10, %v221_v11 }
 0x147   :  { %225 = vst.msk [vmem:[#allocation3] sm:$0x1] %vm224_vm2, %v223_v12 }
 0x148   :  { %236 = dma.vmem_to_hbm [thread:$0]  %s232_s16, 16, %s234_s19, [#allocation4]  }
 0x149   :  { %285 = dma.done.wait [#allocation4], 16  }
 0x14a   :  { %286 = vsyncadd [#allocation4], 4294967280 }
 0x14b   :  { %241 = vsyncpa [#allocation4], 1 }

</bundles_post_ra>
